<compile_context>
chip_gen: v6e
topology: v6e:2x2x1
jax: 0.10.0
libtpu: 0.0.40
codegen_flags: <defaults>
</compile_context>

<pallas_src>
import math

import jax
import jax.numpy as jnp
from jax import lax
from jax.experimental import pallas as pl
from jax.experimental.pallas import tpu as pltpu

LN_EPS = 1e-5

# Row layout of the packed per-layer parameter block (shape (8, D)).
_ROW_FF_B, _ROW_N1_W, _ROW_N1_B, _ROW_N2_W, _ROW_N2_B = 0, 1, 2, 3, 4


def _encoder_kernel(x_ref, ffw_ref, pk_ref, o_ref):
    """One batch element: run all L encoder layers in-kernel.

    x_ref  : (S, D)     input tokens for this batch element
    ffw_ref: (L, D, D)  feed-forward weights, pre-transposed to (in, out)
    pk_ref : (L, 8, D)  packed [ff_b, n1_w, n1_b, n2_w, n2_b, pad, pad, pad]
    o_ref  : (S, D)     output tokens
    """
    S, D = x_ref.shape
    n_layers = ffw_ref.shape[0]
    inv_sqrt_d = 1.0 / math.sqrt(D)

    def layer_body(l, x):
        w = ffw_ref[l]                                   # (D, D)  (in, out)
        pk = pk_ref[l].astype(jnp.float32)               # (8, D)
        ff_b = pk[_ROW_FF_B:_ROW_FF_B + 1, :]            # (1, D) broadcasts
        n1_w = pk[_ROW_N1_W:_ROW_N1_W + 1, :]
        n1_b = pk[_ROW_N1_B:_ROW_N1_B + 1, :]
        n2_w = pk[_ROW_N2_W:_ROW_N2_W + 1, :]
        n2_b = pk[_ROW_N2_B:_ROW_N2_B + 1, :]

        # --- single-head scaled dot-product self-attention (q = k = v = x) ---
        # Fold 1/sqrt(D) into q (O(S*D) multiply instead of O(S^2)).
        q = x * inv_sqrt_d                               # (S, D) f32
        scores = lax.dot_general(                        # q @ x^T -> (S, S)
            q, x, (((1,), (1,)), ((), ())),
            preferred_element_type=jnp.float32)
        m = jnp.max(scores, axis=-1, keepdims=True)
        e = jnp.exp(scores - m)
        attn_w = e / jnp.sum(e, axis=-1, keepdims=True)
        attn = jnp.dot(attn_w, x,                        # (S, D)
                       preferred_element_type=jnp.float32)

        # --- residual + LayerNorm 1 ---
        h = x + attn
        mu = jnp.mean(h, axis=-1, keepdims=True)
        var = jnp.mean((h - mu) ** 2, axis=-1, keepdims=True)
        h = (h - mu) * lax.rsqrt(var + LN_EPS) * n1_w + n1_b

        # --- feed-forward Linear(D, D): canonical (S,D)x(D,D) on the MXU ---
        ff = jnp.dot(h, w, preferred_element_type=jnp.float32) + ff_b

        # --- residual + LayerNorm 2 ---
        h2 = h + ff
        mu2 = jnp.mean(h2, axis=-1, keepdims=True)
        var2 = jnp.mean((h2 - mu2) ** 2, axis=-1, keepdims=True)
        return (h2 - mu2) * lax.rsqrt(var2 + LN_EPS) * n2_w + n2_b

    x = x_ref[...].astype(jnp.float32)
    x = lax.fori_loop(0, n_layers, layer_body, x, unroll=True)
    o_ref[...] = x.astype(o_ref.dtype)


def encoder_forward(x, params):
    """Run the whole L-layer encoder; grid = (B,), layers looped in-kernel."""
    B, S, D = x.shape
    ffw = params["ff_w_t"]                               # (L, D_in, D_out)
    pk = params["pk"]                                    # (L, 8, D)
    L = ffw.shape[0]
    return pl.pallas_call(
        _encoder_kernel,
        out_shape=jax.ShapeDtypeStruct((B, S, D), x.dtype),
        grid_spec=pltpu.PrefetchScalarGridSpec(
            num_scalar_prefetch=0,
            grid=(B,),
            in_specs=[
                # x: one batch element per grid step.
                pl.BlockSpec((None, S, D), lambda b: (b, 0, 0)),
                # full stacked FF weights, resident across all grid steps.
                pl.BlockSpec((L, D, D), lambda b: (0, 0, 0)),
                # full stacked packed per-layer vectors.
                pl.BlockSpec((L, 8, D), lambda b: (0, 0, 0)),
            ],
            out_specs=pl.BlockSpec((None, S, D), lambda b: (b, 0, 0)),
        ),
        compiler_params=pltpu.CompilerParams(
            # batch axis is independent -> shard across v7x's 2 TensorCores.
            dimension_semantics=("parallel",)),
    )(x, ffw, pk)


def init_encoder_params(key, d_model, num_layers, dtype=jnp.float32):
    """Deterministic params, PyTorch-style init, stacked along the layer axis.

    ff_w is generated in PyTorch (out, in) layout and stored pre-transposed
    as (L, in, out) so the kernel's jnp.dot needs no in-kernel relayout.
    """
    bound = 1.0 / math.sqrt(d_model)
    ff_w_t_list, pk_list = [], []
    ones = jnp.ones((d_model,), dtype)
    zeros = jnp.zeros((d_model,), dtype)
    for l in range(num_layers):
        k_w, k_b = jax.random.split(jax.random.fold_in(key, l))
        ff_w = jax.random.uniform(k_w, (d_model, d_model), dtype,
                                  minval=-bound, maxval=bound)   # (out, in)
        ff_b = jax.random.uniform(k_b, (d_model,), dtype,
                                  minval=-bound, maxval=bound)
        # packed rows: [ff_b, n1_w, n1_b, n2_w, n2_b, pad, pad, pad]
        pk = jnp.stack([ff_b, ones, zeros, ones, zeros,
                        zeros, zeros, zeros], axis=0)            # (8, D)
        ff_w_t_list.append(ff_w.T)                               # (in, out)
        pk_list.append(pk)
    return {"ff_w_t": jnp.stack(ff_w_t_list),                    # (L, D, D)
            "pk": jnp.stack(pk_list)}                            # (L, 8, D)


def encoder_forward_ref(x, params):
    """Pure-JAX f32 reference (true module semantics) for correctness."""
    d = x.shape[-1]
    L = params["ff_w_t"].shape[0]
    for l in range(L):
        ff_w_t = params["ff_w_t"][l]                             # (in, out)
        pk = params["pk"][l]
        ff_b, n1_w, n1_b, n2_w, n2_b = pk[0], pk[1], pk[2], pk[3], pk[4]
        scores = jnp.einsum('bqd,bkd->bqk', x, x) / math.sqrt(d)
        w = jax.nn.softmax(scores, axis=-1)
        attn = jnp.einsum('bqk,bkd->bqd', w, x)
        h = x + attn
        h = (h - h.mean(-1, keepdims=True)) / jnp.sqrt(
            h.var(-1, keepdims=True) + LN_EPS)
        h = h * n1_w + n1_b
        ff = jnp.einsum('bsd,de->bse', h, ff_w_t) + ff_b
        h2 = h + ff
        h2 = (h2 - h2.mean(-1, keepdims=True)) / jnp.sqrt(
            h2.var(-1, keepdims=True) + LN_EPS)
        x = h2 * n2_w + n2_b
    return x


if __name__ == "__main__":
    B, S, D = 2, 8, 32          # batch, seq, d_model
    nhead, num_layers = 4, 2    # nhead unused by the reference forward

    key = jax.random.PRNGKey(0)
    kx, kp = jax.random.split(key)
    x = jax.random.normal(kx, (B, S, D), jnp.float32)
    params = init_encoder_params(kp, D, num_layers)

    out = jax.block_until_ready(encoder_forward(x, params))
    ref = encoder_forward_ref(x, params)

    assert out.shape == (B, S, D)
    # All-f32 path (MXU f32 operands, f32 accumulation): only reduction-order
    # differences remain vs the pure-JAX reference.
    assert jnp.allclose(out, ref, atol=1e-4, rtol=1e-4), "mismatch vs reference"

    print("KERNEL_OK")
</pallas_src>

<mosaic_0001>
module attributes {stable_mosaic.version = 11 : i64} {
  func.func @_encoder_kernel(%arg0: i32, %arg1: memref<1x8x32xf32, #tpu.memory_space<vmem>>, %arg2: memref<2x32x32xf32, #tpu.memory_space<vmem>>, %arg3: memref<2x8x32xf32, #tpu.memory_space<vmem>>, %arg4: memref<1x8x32xf32, #tpu.memory_space<vmem>>) attributes {dimension_semantics = [#tpu.dimension_semantics<parallel>], iteration_bounds = array<i64: 2>, scalar_prefetch = 0 : i64, scratch_operands = 0 : i64, tpu.core_type = #tpu.core_type<tc>, window_params = [{transform_indices = @transform_0, window_bounds = array<i64: 1, 8, 32>}, {pipeline_mode = #tpu.pipeline_mode<synchronous>, transform_indices = @transform_1, window_bounds = array<i64: 2, 32, 32>}, {pipeline_mode = #tpu.pipeline_mode<synchronous>, transform_indices = @transform_2, window_bounds = array<i64: 2, 8, 32>}, {transform_indices = @transform_3, window_bounds = array<i64: 1, 8, 32>}]} {
    %c0 = arith.constant 0 : index
    %c0_0 = arith.constant 0 : index
    %c0_1 = arith.constant 0 : index
    %0 = vector.load %arg1[%c0, %c0_0, %c0_1] : memref<1x8x32xf32, #tpu.memory_space<vmem>>, vector<1x8x32xf32>
    %1 = vector.shape_cast %0 : vector<1x8x32xf32> to vector<8x32xf32>
    %c0_i32 = arith.constant 0 : i32
    %2 = arith.index_cast %c0_i32 : i32 to index
    %c0_2 = arith.constant 0 : index
    %c0_3 = arith.constant 0 : index
    %3 = vector.load %arg2[%2, %c0_2, %c0_3] : memref<2x32x32xf32, #tpu.memory_space<vmem>>, vector<1x32x32xf32>
    %4 = vector.shape_cast %3 : vector<1x32x32xf32> to vector<32x32xf32>
    %5 = arith.index_cast %c0_i32 : i32 to index
    %c0_4 = arith.constant 0 : index
    %c0_5 = arith.constant 0 : index
    %6 = vector.load %arg3[%5, %c0_4, %c0_5] : memref<2x8x32xf32, #tpu.memory_space<vmem>>, vector<1x8x32xf32>
    %7 = vector.shape_cast %6 : vector<1x8x32xf32> to vector<8x32xf32>
    %8 = vector.extract_strided_slice %7 {offsets = [0, 0], sizes = [1, 32], strides = [1, 1]} : vector<8x32xf32> to vector<1x32xf32>
    %9 = vector.extract_strided_slice %7 {offsets = [1, 0], sizes = [1, 32], strides = [1, 1]} : vector<8x32xf32> to vector<1x32xf32>
    %10 = vector.extract_strided_slice %7 {offsets = [2, 0], sizes = [1, 32], strides = [1, 1]} : vector<8x32xf32> to vector<1x32xf32>
    %11 = vector.extract_strided_slice %7 {offsets = [3, 0], sizes = [1, 32], strides = [1, 1]} : vector<8x32xf32> to vector<1x32xf32>
    %12 = vector.extract_strided_slice %7 {offsets = [4, 0], sizes = [1, 32], strides = [1, 1]} : vector<8x32xf32> to vector<1x32xf32>
    %cst = arith.constant 0.176776692 : f32
    %13 = vector.broadcast %cst : f32 to vector<8x32xf32>
    %14 = arith.mulf %1, %13 : vector<8x32xf32>
    %cst_6 = arith.constant dense<0.000000e+00> : vector<8x8xf32>
    %15 = tpu.matmul %14, %1, %cst_6 {dimension_numbers = #tpu.dot_dimension_numbers<[1], [1], [0], [0], [0, 0, 1, 0], [], []>} : vector<8x32xf32>, vector<8x32xf32>, vector<8x8xf32> -> vector<8x8xf32>
    %cst_7 = arith.constant dense<0xFF800000> : vector<8xf32>
    %16 = vector.multi_reduction <maximumf>, %15, %cst_7 [1] : vector<8x8xf32> to vector<8xf32>
    %17 = vector.shape_cast %16 : vector<8xf32> to vector<8x1xf32>
    %18 = vector.broadcast %17 : vector<8x1xf32> to vector<8x8xf32>
    %19 = arith.subf %15, %18 : vector<8x8xf32>
    %20 = math.exp %19 : vector<8x8xf32>
    %cst_8 = arith.constant dense<0.000000e+00> : vector<8xf32>
    %21 = vector.multi_reduction <add>, %20, %cst_8 [1] : vector<8x8xf32> to vector<8xf32>
    %22 = vector.shape_cast %21 : vector<8xf32> to vector<8x1xf32>
    %23 = vector.broadcast %22 : vector<8x1xf32> to vector<8x8xf32>
    %24 = arith.divf %20, %23 : vector<8x8xf32>
    %cst_9 = arith.constant dense<0.000000e+00> : vector<8x32xf32>
    %25 = tpu.matmul %24, %1, %cst_9 {dimension_numbers = #tpu.dot_dimension_numbers<[1], [0], [0], [1], [0, 0, 1, 1], [], []>} : vector<8x8xf32>, vector<8x32xf32>, vector<8x32xf32> -> vector<8x32xf32>
    %26 = arith.addf %1, %25 : vector<8x32xf32>
    %cst_10 = arith.constant dense<0.000000e+00> : vector<8xf32>
    %27 = vector.multi_reduction <add>, %26, %cst_10 [1] : vector<8x32xf32> to vector<8xf32>
    %28 = vector.shape_cast %27 : vector<8xf32> to vector<8x1xf32>
    %cst_11 = arith.constant 3.200000e+01 : f32
    %29 = vector.broadcast %cst_11 : f32 to vector<8x1xf32>
    %30 = arith.divf %28, %29 : vector<8x1xf32>
    %31 = vector.broadcast %30 : vector<8x1xf32> to vector<8x32xf32>
    %32 = arith.subf %26, %31 : vector<8x32xf32>
    %33 = arith.mulf %32, %32 : vector<8x32xf32>
    %cst_12 = arith.constant dense<0.000000e+00> : vector<8xf32>
    %34 = vector.multi_reduction <add>, %33, %cst_12 [1] : vector<8x32xf32> to vector<8xf32>
    %35 = vector.shape_cast %34 : vector<8xf32> to vector<8x1xf32>
    %cst_13 = arith.constant 3.200000e+01 : f32
    %36 = vector.broadcast %cst_13 : f32 to vector<8x1xf32>
    %37 = arith.divf %35, %36 : vector<8x1xf32>
    %38 = vector.broadcast %30 : vector<8x1xf32> to vector<8x32xf32>
    %39 = arith.subf %26, %38 : vector<8x32xf32>
    %cst_14 = arith.constant 9.99999974E-6 : f32
    %40 = vector.broadcast %cst_14 : f32 to vector<8x1xf32>
    %41 = arith.addf %37, %40 : vector<8x1xf32>
    %42 = math.rsqrt %41 : vector<8x1xf32>
    %43 = vector.broadcast %42 : vector<8x1xf32> to vector<8x32xf32>
    %44 = arith.mulf %39, %43 : vector<8x32xf32>
    %45 = vector.broadcast %9 : vector<1x32xf32> to vector<8x32xf32>
    %46 = arith.mulf %44, %45 : vector<8x32xf32>
    %47 = vector.broadcast %10 : vector<1x32xf32> to vector<8x32xf32>
    %48 = arith.addf %46, %47 : vector<8x32xf32>
    %cst_15 = arith.constant dense<0.000000e+00> : vector<8x32xf32>
    %49 = tpu.matmul %48, %4, %cst_15 {dimension_numbers = #tpu.dot_dimension_numbers<[1], [0], [0], [1], [0, 0, 1, 1], [], []>} : vector<8x32xf32>, vector<32x32xf32>, vector<8x32xf32> -> vector<8x32xf32>
    %50 = vector.broadcast %8 : vector<1x32xf32> to vector<8x32xf32>
    %51 = arith.addf %49, %50 : vector<8x32xf32>
    %52 = arith.addf %48, %51 : vector<8x32xf32>
    %cst_16 = arith.constant dense<0.000000e+00> : vector<8xf32>
    %53 = vector.multi_reduction <add>, %52, %cst_16 [1] : vector<8x32xf32> to vector<8xf32>
    %54 = vector.shape_cast %53 : vector<8xf32> to vector<8x1xf32>
    %cst_17 = arith.constant 3.200000e+01 : f32
    %55 = vector.broadcast %cst_17 : f32 to vector<8x1xf32>
    %56 = arith.divf %54, %55 : vector<8x1xf32>
    %57 = vector.broadcast %56 : vector<8x1xf32> to vector<8x32xf32>
    %58 = arith.subf %52, %57 : vector<8x32xf32>
    %59 = arith.mulf %58, %58 : vector<8x32xf32>
    %cst_18 = arith.constant dense<0.000000e+00> : vector<8xf32>
    %60 = vector.multi_reduction <add>, %59, %cst_18 [1] : vector<8x32xf32> to vector<8xf32>
    %61 = vector.shape_cast %60 : vector<8xf32> to vector<8x1xf32>
    %cst_19 = arith.constant 3.200000e+01 : f32
    %62 = vector.broadcast %cst_19 : f32 to vector<8x1xf32>
    %63 = arith.divf %61, %62 : vector<8x1xf32>
    %64 = vector.broadcast %56 : vector<8x1xf32> to vector<8x32xf32>
    %65 = arith.subf %52, %64 : vector<8x32xf32>
    %cst_20 = arith.constant 9.99999974E-6 : f32
    %66 = vector.broadcast %cst_20 : f32 to vector<8x1xf32>
    %67 = arith.addf %63, %66 : vector<8x1xf32>
    %68 = math.rsqrt %67 : vector<8x1xf32>
    %69 = vector.broadcast %68 : vector<8x1xf32> to vector<8x32xf32>
    %70 = arith.mulf %65, %69 : vector<8x32xf32>
    %71 = vector.broadcast %11 : vector<1x32xf32> to vector<8x32xf32>
    %72 = arith.mulf %70, %71 : vector<8x32xf32>
    %73 = vector.broadcast %12 : vector<1x32xf32> to vector<8x32xf32>
    %74 = arith.addf %72, %73 : vector<8x32xf32>
    %c1_i32 = arith.constant 1 : i32
    %75 = arith.index_cast %c1_i32 : i32 to index
    %c0_21 = arith.constant 0 : index
    %c0_22 = arith.constant 0 : index
    %76 = vector.load %arg2[%75, %c0_21, %c0_22] : memref<2x32x32xf32, #tpu.memory_space<vmem>>, vector<1x32x32xf32>
    %77 = vector.shape_cast %76 : vector<1x32x32xf32> to vector<32x32xf32>
    %78 = arith.index_cast %c1_i32 : i32 to index
    %c0_23 = arith.constant 0 : index
    %c0_24 = arith.constant 0 : index
    %79 = vector.load %arg3[%78, %c0_23, %c0_24] : memref<2x8x32xf32, #tpu.memory_space<vmem>>, vector<1x8x32xf32>
    %80 = vector.shape_cast %79 : vector<1x8x32xf32> to vector<8x32xf32>
    %81 = vector.extract_strided_slice %80 {offsets = [0, 0], sizes = [1, 32], strides = [1, 1]} : vector<8x32xf32> to vector<1x32xf32>
    %82 = vector.extract_strided_slice %80 {offsets = [1, 0], sizes = [1, 32], strides = [1, 1]} : vector<8x32xf32> to vector<1x32xf32>
    %83 = vector.extract_strided_slice %80 {offsets = [2, 0], sizes = [1, 32], strides = [1, 1]} : vector<8x32xf32> to vector<1x32xf32>
    %84 = vector.extract_strided_slice %80 {offsets = [3, 0], sizes = [1, 32], strides = [1, 1]} : vector<8x32xf32> to vector<1x32xf32>
    %85 = vector.extract_strided_slice %80 {offsets = [4, 0], sizes = [1, 32], strides = [1, 1]} : vector<8x32xf32> to vector<1x32xf32>
    %cst_25 = arith.constant 0.176776692 : f32
    %86 = vector.broadcast %cst_25 : f32 to vector<8x32xf32>
    %87 = arith.mulf %74, %86 : vector<8x32xf32>
    %cst_26 = arith.constant dense<0.000000e+00> : vector<8x8xf32>
    %88 = tpu.matmul %87, %74, %cst_26 {dimension_numbers = #tpu.dot_dimension_numbers<[1], [1], [0], [0], [0, 0, 1, 0], [], []>} : vector<8x32xf32>, vector<8x32xf32>, vector<8x8xf32> -> vector<8x8xf32>
    %cst_27 = arith.constant dense<0xFF800000> : vector<8xf32>
    %89 = vector.multi_reduction <maximumf>, %88, %cst_27 [1] : vector<8x8xf32> to vector<8xf32>
    %90 = vector.shape_cast %89 : vector<8xf32> to vector<8x1xf32>
    %91 = vector.broadcast %90 : vector<8x1xf32> to vector<8x8xf32>
    %92 = arith.subf %88, %91 : vector<8x8xf32>
    %93 = math.exp %92 : vector<8x8xf32>
    %cst_28 = arith.constant dense<0.000000e+00> : vector<8xf32>
    %94 = vector.multi_reduction <add>, %93, %cst_28 [1] : vector<8x8xf32> to vector<8xf32>
    %95 = vector.shape_cast %94 : vector<8xf32> to vector<8x1xf32>
    %96 = vector.broadcast %95 : vector<8x1xf32> to vector<8x8xf32>
    %97 = arith.divf %93, %96 : vector<8x8xf32>
    %cst_29 = arith.constant dense<0.000000e+00> : vector<8x32xf32>
    %98 = tpu.matmul %97, %74, %cst_29 {dimension_numbers = #tpu.dot_dimension_numbers<[1], [0], [0], [1], [0, 0, 1, 1], [], []>} : vector<8x8xf32>, vector<8x32xf32>, vector<8x32xf32> -> vector<8x32xf32>
    %99 = arith.addf %74, %98 : vector<8x32xf32>
    %cst_30 = arith.constant dense<0.000000e+00> : vector<8xf32>
    %100 = vector.multi_reduction <add>, %99, %cst_30 [1] : vector<8x32xf32> to vector<8xf32>
    %101 = vector.shape_cast %100 : vector<8xf32> to vector<8x1xf32>
    %cst_31 = arith.constant 3.200000e+01 : f32
    %102 = vector.broadcast %cst_31 : f32 to vector<8x1xf32>
    %103 = arith.divf %101, %102 : vector<8x1xf32>
    %104 = vector.broadcast %103 : vector<8x1xf32> to vector<8x32xf32>
    %105 = arith.subf %99, %104 : vector<8x32xf32>
    %106 = arith.mulf %105, %105 : vector<8x32xf32>
    %cst_32 = arith.constant dense<0.000000e+00> : vector<8xf32>
    %107 = vector.multi_reduction <add>, %106, %cst_32 [1] : vector<8x32xf32> to vector<8xf32>
    %108 = vector.shape_cast %107 : vector<8xf32> to vector<8x1xf32>
    %cst_33 = arith.constant 3.200000e+01 : f32
    %109 = vector.broadcast %cst_33 : f32 to vector<8x1xf32>
    %110 = arith.divf %108, %109 : vector<8x1xf32>
    %111 = vector.broadcast %103 : vector<8x1xf32> to vector<8x32xf32>
    %112 = arith.subf %99, %111 : vector<8x32xf32>
    %cst_34 = arith.constant 9.99999974E-6 : f32
    %113 = vector.broadcast %cst_34 : f32 to vector<8x1xf32>
    %114 = arith.addf %110, %113 : vector<8x1xf32>
    %115 = math.rsqrt %114 : vector<8x1xf32>
    %116 = vector.broadcast %115 : vector<8x1xf32> to vector<8x32xf32>
    %117 = arith.mulf %112, %116 : vector<8x32xf32>
    %118 = vector.broadcast %82 : vector<1x32xf32> to vector<8x32xf32>
    %119 = arith.mulf %117, %118 : vector<8x32xf32>
    %120 = vector.broadcast %83 : vector<1x32xf32> to vector<8x32xf32>
    %121 = arith.addf %119, %120 : vector<8x32xf32>
    %cst_35 = arith.constant dense<0.000000e+00> : vector<8x32xf32>
    %122 = tpu.matmul %121, %77, %cst_35 {dimension_numbers = #tpu.dot_dimension_numbers<[1], [0], [0], [1], [0, 0, 1, 1], [], []>} : vector<8x32xf32>, vector<32x32xf32>, vector<8x32xf32> -> vector<8x32xf32>
    %123 = vector.broadcast %81 : vector<1x32xf32> to vector<8x32xf32>
    %124 = arith.addf %122, %123 : vector<8x32xf32>
    %125 = arith.addf %121, %124 : vector<8x32xf32>
    %cst_36 = arith.constant dense<0.000000e+00> : vector<8xf32>
    %126 = vector.multi_reduction <add>, %125, %cst_36 [1] : vector<8x32xf32> to vector<8xf32>
    %127 = vector.shape_cast %126 : vector<8xf32> to vector<8x1xf32>
    %cst_37 = arith.constant 3.200000e+01 : f32
    %128 = vector.broadcast %cst_37 : f32 to vector<8x1xf32>
    %129 = arith.divf %127, %128 : vector<8x1xf32>
    %130 = vector.broadcast %129 : vector<8x1xf32> to vector<8x32xf32>
    %131 = arith.subf %125, %130 : vector<8x32xf32>
    %132 = arith.mulf %131, %131 : vector<8x32xf32>
    %cst_38 = arith.constant dense<0.000000e+00> : vector<8xf32>
    %133 = vector.multi_reduction <add>, %132, %cst_38 [1] : vector<8x32xf32> to vector<8xf32>
    %134 = vector.shape_cast %133 : vector<8xf32> to vector<8x1xf32>
    %cst_39 = arith.constant 3.200000e+01 : f32
    %135 = vector.broadcast %cst_39 : f32 to vector<8x1xf32>
    %136 = arith.divf %134, %135 : vector<8x1xf32>
    %137 = vector.broadcast %129 : vector<8x1xf32> to vector<8x32xf32>
    %138 = arith.subf %125, %137 : vector<8x32xf32>
    %cst_40 = arith.constant 9.99999974E-6 : f32
    %139 = vector.broadcast %cst_40 : f32 to vector<8x1xf32>
    %140 = arith.addf %136, %139 : vector<8x1xf32>
    %141 = math.rsqrt %140 : vector<8x1xf32>
    %142 = vector.broadcast %141 : vector<8x1xf32> to vector<8x32xf32>
    %143 = arith.mulf %138, %142 : vector<8x32xf32>
    %144 = vector.broadcast %84 : vector<1x32xf32> to vector<8x32xf32>
    %145 = arith.mulf %143, %144 : vector<8x32xf32>
    %146 = vector.broadcast %85 : vector<1x32xf32> to vector<8x32xf32>
    %147 = arith.addf %145, %146 : vector<8x32xf32>
    %c2_i32 = arith.constant 2 : i32
    %c0_41 = arith.constant 0 : index
    %c0_42 = arith.constant 0 : index
    %c0_43 = arith.constant 0 : index
    %148 = vector.load %arg4[%c0_41, %c0_42, %c0_43] : memref<1x8x32xf32, #tpu.memory_space<vmem>>, vector<1x8x32xf32>
    %149 = vector.shape_cast %148 : vector<1x8x32xf32> to vector<8x32xf32>
    %150 = vector.shape_cast %147 : vector<8x32xf32> to vector<1x8x32xf32>
    tpu.vector_store %arg4[%c0_41, %c0_42, %c0_43], %150 {strides = array<i32>} : memref<1x8x32xf32, #tpu.memory_space<vmem>>, vector<1x8x32xf32>,
    return
  }
  func.func @transform_0(%arg0: i32) -> (i32, i32, i32) {
    %c0_i32 = arith.constant 0 : i32
    %c0_i32_0 = arith.constant 0 : i32
    %c0_i32_1 = arith.constant 0 : i32
    return %arg0, %c0_i32, %c0_i32_0 : i32, i32, i32
  }
  func.func @transform_1(%arg0: i32) -> (i32, i32, i32) {
    %c0_i32 = arith.constant 0 : i32
    %c0_i32_0 = arith.constant 0 : i32
    %c0_i32_1 = arith.constant 0 : i32
    %c0_i32_2 = arith.constant 0 : i32
    return %c0_i32, %c0_i32_0, %c0_i32_1 : i32, i32, i32
  }
  func.func @transform_2(%arg0: i32) -> (i32, i32, i32) {
    %c0_i32 = arith.constant 0 : i32
    %c0_i32_0 = arith.constant 0 : i32
    %c0_i32_1 = arith.constant 0 : i32
    %c0_i32_2 = arith.constant 0 : i32
    return %c0_i32, %c0_i32_0, %c0_i32_1 : i32, i32, i32
  }
  func.func @transform_3(%arg0: i32) -> (i32, i32, i32) {
    %c0_i32 = arith.constant 0 : i32
    %c0_i32_0 = arith.constant 0 : i32
    %c0_i32_1 = arith.constant 0 : i32
    return %arg0, %c0_i32, %c0_i32_0 : i32, i32, i32
  }
}

</mosaic_0001>

<bundles_post_ra>
// kernel: tpu_custom_call.1
= control target key start
LH: loop header
LB: loop body
LE: loop exit
PB: predicated region body
PF: predicated region fallthrough
CT: control target
= control target key end

     0   :  { %8 = vsyncpa [#allocation3], 0  ;;  %s1497_s0 = inlined_call_operand.hbm [shape: f32[2,8,32], index: 0, kind: input, shape index: {}]   ;;  %s1498_s1 = inlined_call_operand.hbm [shape: f32[2,32,32], index: 1, kind: input, shape index: {}]   ;;  %s1499_s2 = inlined_call_operand.hbm [shape: f32[2,8,32], index: 2, kind: input, shape index: {}]   ;;  %s1500_s3 = inlined_call_operand.hbm [shape: f32[2,8,32], index: 3, kind: output, shape index: {}]  }
   0x1   :  { %10 = vsyncpa [#allocation3 + $0x1], 0 }
   0x2   :  { %11 = vsyncpa [#allocation6], 0 }
   0x3   :  { %12 = vsyncpa [#allocation4], 0 }
   0x4   :  { %14 = vsyncpa [#allocation4 + $0x1], 0  ;;  %s1256_s12 = smov 0   ;;  %s1258_s13 = smov 0  }
   0x5   :  { %s1260_s14 = smov 0   ;;  %s1262_s15 = smov 0  }
   0x6 LB: > { %s1277_s16 = sadd.s32 4294967295, %s1226_s15   ;;  %s907_s17 = sadd.s32 4294967294, %s1226_s15   ;;  %s1226_s15 = sphi %s1262_s15, %s1522_s15   ;;  %s1222_s14 = sphi %s1260_s14, %s1521_s14   ;;  %s1218_s13 = sphi %s1258_s13, %s1520_s13   ;;  %s1214_s12 = sphi %s1256_s12, %s1519_s12  }
   0x7   : > { %p40_p0 = scmp.ne.s32.totalorder %s1218_s13, %s1214_s12  ;;  %p1501_p1 = scmp.eq.s32.totalorder %s1277_s16, 0 }
   0x8   : > { %p112_p3 = scmp.eq.s32.totalorder %s907_s17, 1  ;;  %p908_p5 = scmp.ge.s32.totalorder %s1226_s15, 1 }
   0x9   : > { %p1286_p4 = por %p1501_p1, %p40_p0  ;;  %p119_p7 = scmp.lt.s32.totalorder %s1226_s15, 3 }
   0xa   : > { %p1291_p6 = por %p112_p3, %p40_p0  ;;  %s1228_s21 = smov [#allocation5]  }
   0xb   : > { %s1505_s18 = scalar_select %p1286_p4, 1, 0 }
   0xc   : > { %s1506_s19 = scalar_select %p1291_p6, 1, 0 }
   0xd   : > { %p1296_p8 = pnand %p908_p5, %p119_p7  ;;  %s131_s22 = sshll.u32 %s1228_s21, 4  ;;  %s132_s22 = int_to_ptr.vmem [resolvable:$true] %s131_s22 }
   0xe   : > { %s1229_s24 = smov [#allocation7]   ;;  %s1089_s26 = scalar_lea.vmem %s132_s22, 1024 }
   0xf   : > { %s1507_s20 = scalar_select %p1296_p8, 1, 0 }
  0x10   : > { %p1003_p9 = pneg %p1296_p8  ;;  %s144_s25 = sshll.u32 %s1229_s24, 4  ;;  %s145_s25 = int_to_ptr.vmem [resolvable:$true] %s144_s25 }
  0x11   : > { %p1090_p13 = scmp.ne.s32.totalorder %s132_s22, %s1089_s26  ;;  %p1097_p5 = scmp.lt.s32.totalorder %s132_s22, %s132_s22 }
  0x12   : > { %p1305_p11 = pnand %p1003_p9, %p1501_p1  ;;  %p1098_p7 = scmp.lt.s32.totalorder %s1089_s26, %s1089_s26 }
  0x14   : > { %p1080_p12 = pneg %p1305_p11  ;;  %p1099_p10 = por %p1098_p7, %p1097_p5 }
  0x16   : > { %p1092_p0 = pnand %p1090_p13, %p1080_p12 }
  0x18   : > { %p1093_p3 = pneg %p1092_p0 }
  0x1a   : > { %p1100_p9 = pnand %p1099_p10, %p1093_p3 }
  0x1c   : > { %1103 = shalt.err (!%p1100_p9)
}
  0x1d   : > { %s1230_s27 = smov 128   ;;  %s1231_s28 = smov 8  }
  0x1e   : > { %1006 = dma.hbm_to_vmem [thread:$0]  (!%p1305_p11), %s1498_s1, 1024, %s132_s22, [#allocation6], %s1230_s27, %s1230_s27, %s1231_s28  }
  0x1f   : > { %s1115_s4 = scalar_lea.vmem %s145_s25, 256  ;;  %p1123_p2 = scmp.lt.s32.totalorder %s145_s25, %s145_s25 }
  0x20   : > { %p1116_p1 = scmp.ne.s32.totalorder %s145_s25, %s1115_s4  ;;  %p1124_p6 = scmp.lt.s32.totalorder %s1115_s4, %s1115_s4 }
  0x22   : > { %p1118_p13 = pnand %p1116_p1, %p1080_p12  ;;  %p1125_p5 = por %p1124_p6, %p1123_p2 }
  0x24   : > { %p1119_p0 = pneg %p1118_p13 }
  0x26   : > { %p1126_p10 = pnand %p1125_p5, %p1119_p0 }
  0x28   : > { %1129 = shalt.err (!%p1126_p10)
}
  0x29   : > { %1009 = dma.hbm_to_vmem [thread:$0]  (!%p1305_p11), %s1499_s2, 256, %s145_s25, [#allocation6], %s1230_s27, %s1230_s27, %s1231_s28  }
  0x2a   : > { %s1328_s7 = sadd.s32 1, %s1226_s15   ;;  %s27_s8 = sadd.s32 1, %s1222_s14 }
  0x2b   : > { %s24_s9 = ssub.s32 %s1226_s15, %s1328_s7  ;;  %p34_p1 = scmp.ne.s32.totalorder %s1222_s14, %s1218_s13 }
  0x2c   : > { %p25_p2 = scmp.eq.s32.totalorder %s24_s9, 0  ;;  %p35_p6 = scmp.eq.s32.totalorder %s1226_s15, 0 }
  0x2d   : > { %p1509_p12 = scmp.eq.s32.totalorder %s1277_s16, 1  ;;  %p1020_p7 = scmp.lt.s32.totalorder %s1226_s15, 2 }
  0x2e   : > { %s1344_s11 = scalar_select %p25_p2, %s1222_s14, %s27_s8  }
  0x2f   : > { %p1338_p3 = por %p1509_p12, %p34_p1  ;;  %p36_p9 = por %p35_p6, %p34_p1 }
  0x30   : > { %s158_s17 = sand.u32 1, %s1222_s14   ;;  %s913_s22 = sshll.u32 %s1226_s15, 7 }
  0x31   : > { %s1510_s10 = scalar_select %p1338_p3, 1, 0 }
  0x32   : > { %s912_s21 = sshll.u32 %s158_s17, 3  ;;  %s1351_s25 = scalar_lea.hbm %s1497_s0, %s913_s22 }
  0x33   : > { %s162_s26 = scalar_lea.vmem [#allocation2], %s912_s21  ;;  %p1353_p11 = pnand %p1020_p7, %p36_p9 }
  0x34   : > { %s169_s27 = sshll.u32 %s162_s26, 4  ;;  %s159_s29 = scalar_lea.sflag [#allocation3], %s158_s17  ;;  %s170_s27 = int_to_ptr.vmem [resolvable:$true] %s169_s27 }
  0x35   : > { %s1130_s30 = scalar_lea.hbm %s1351_s25, 128  ;;  %p1132_p0 = pneg %p1353_p11 }
  0x36   : > { %p1131_p13 = scmp.ne.s32.totalorder %s1351_s25, %s1130_s30  ;;  %s1135_s6 = scalar_lea.hbm %s1497_s0, 256 }
  0x37   : > { %p1136_p1 = scmp.lt.s32.totalorder %s1351_s25, %s1497_s0  ;;  %p1137_p2 = scmp.lt.s32.totalorder %s1135_s6, %s1130_s30 }
  0x38   : > { %p1133_p5 = pnand %p1132_p0, %p1131_p13 }
  0x39   : > { %p1138_p6 = por %p1137_p2, %p1136_p1 }
  0x3a   : > { %p1134_p10 = pneg %p1133_p5 }
  0x3c   : > { %p1139_p12 = pnand %p1138_p6, %p1134_p10 }
  0x3e   : > { %1142 = shalt.err (!%p1139_p12)
}
  0x3f   : > { %s1143_s21 = scalar_lea.vmem %s170_s27, 128  ;;  %s1232_s17 = smov [#allocation2]  }
  0x40   : > { %p1144_p7 = scmp.ne.s32.totalorder %s170_s27, %s1143_s21  ;;  %s1148_s22 = sshll.u32 %s1232_s17, 4  ;;  %s1149_s22 = int_to_ptr.vmem [resolvable:$false] %s1148_s22 }
  0x41   : > { %s1150_s23 = scalar_lea.vmem %s1149_s22, 256  ;;  %p1151_p13 = scmp.lt.s32.totalorder %s170_s27, %s1149_s22 }
  0x42   : > { %p1146_p9 = pnand %p1144_p7, %p1132_p0  ;;  %p1152_p5 = scmp.lt.s32.totalorder %s1150_s23, %s1143_s21 }
  0x44   : > { %p1147_p3 = pneg %p1146_p9  ;;  %p1153_p4 = por %p1152_p5, %p1151_p13 }
  0x46   : > { %p1154_p8 = pnand %p1153_p4, %p1147_p3 }
  0x48   : > { %1157 = shalt.err (!%p1154_p8)
}
  0x49   : > { %1013 = dma.hbm_to_vmem [thread:$0]  (!%p1353_p11), %s1351_s25, 128, %s170_s27, %s159_s29  }
  0x4a   : > { %p1512_p10 = scmp.ne.s32.totalorder %s1507_s20, 0 }
  0x4b   : > { %s1374_s24 = sand.u32 (!%p1512_p10), 1, %s1218_s13   ;;  %p1513_p4 = scmp.ne.s32.totalorder (!%p1512_p10), %s1505_s18, 0 }
  0x4c   : > { %178 = sbr.rel (%p1512_p10) target bundleno = 3133 (0xc3d), region = 32  ;;  %s915_s26 = sshll.u32 (!%p1512_p10), %s1374_s24, 3 }
  0x4d   : > { %s181_s30 = scalar_lea.sflag (!%p1512_p10), [#allocation3], %s1374_s24  ;;  %s184_s4 = scalar_lea.vmem (!%p1512_p10), [#allocation2], %s915_s26 }
  0x51   : > { %1201 = dma.done.wait (%p1513_p4), %s181_s30, 128  }
  0x52   : > { %1203 = vsyncadd (%p1513_p4), %s181_s30, 4294967168  ;;  %p1514_p8 = scmp.eq.s32.totalorder %s1277_s16, 0 }
  0x54   : > { %1205 = dma.done.wait (%p1514_p8), [#allocation6], 1280   ;;  %p1515_p3 = pmov %p1514_p8 }
  0x55   : > { %v1233_v0 = vmov 0.0   ;;  %vm1234_vm0 = vmmov 0   ;;  %vm222_vm1 = vcmask 261120   ;;  %v215_v1 = vld [vmem:[%s184_s4] sm:$0xff]  ;;  %vm299_vm2 = vcmask 64512   ;;  %v217_v25 = vld [vmem:[#allocation5 + $0x8] sm:$0xff] }
  0x56   : > { %1207 = vsyncadd (%p1515_p3), [#allocation6], 4294966016  ;;  %949 = vmatprep.subr.mxu0 %v1233_v0  ;;  %951 = vmatprep.mubr.msk.f32.mxu0 %vm1234_vm0, %v1233_v0  ;;  %v221_v2 = vmul.f32 0.17677669, %v215_v1  ;;  %v219_v23 = vld [vmem:[#allocation5 + $0x18] sm:$0xff]  ;;  %v218_v24 = vld [vmem:[#allocation5 + $0x10] sm:$0xff]  ;;  %v399_v30 = vlaneseq }
  0x57   : > { %959 = vmatprep.subr.mxu1 %v1233_v0  ;;  %967 = vmatprep.mubr.msk.f32.mxu1 %vm1234_vm0, %v1233_v0  ;;  %v216_v26 = vld [vmem:[#allocation5] sm:$0xff]  ;;  %s928_s18 = sshll.u32 %s1277_s16, 7  ;;  %s214_s20 = scalar_lea.vmem [#allocation8], %s915_s26 }
  0x58   : > { %950 = vmatpush3.xpose.msk.msra.mxu0 %vm222_vm1, %v215_v1  ;;  %960 = vmatpush3.msra.mxu1 %v219_v23  ;;  %v1411_v31 = vshrl.u32 %v399_v30, 7  ;;  %v220_v33 = vld [vmem:[#allocation7] sm:$0xff]  ;;  %v513_v23 = vld [vmem:[#allocation5 + $0x30] sm:$0xff]  ;;  %s818_s25 = sshll.u32 %s214_s20, 4  ;;  %s816_s29 = scalar_lea.hbm %s1500_s3, %s928_s18  ;;  %s819_s25 = int_to_ptr.vmem [resolvable:$true] %s818_s25 }
  0x59   : > { %954 = vmatprep.subr.mxu0 %v1233_v0  ;;  %961 = vmatprep.subr.mxu1 %v1233_v0  ;;  %s805_s5 = scalar_lea.sflag [#allocation4], %s1374_s24  ;;  %s1158_s6 = scalar_lea.vmem %s819_s25, 128 }
  0x5a   : > { %962 = vmatpush3.msra.mxu1 %v218_v24  ;;  %v401_v32 = vsub.s32 1, %v1411_v31  ;;  %v406_v34 = vsub.s32 2, %v1411_v31  ;;  %v411_v41 = vsub.s32 0, %v1411_v31  ;;  %v502_v56 = vsub.s32 3, %v1411_v31  ;;  %v512_v24 = vld [vmem:[#allocation5 + $0x28] sm:$0xff]  ;;  %p1159_p11 = scmp.ne.s32.totalorder %s819_s25, %s1158_s6  ;;  %p1516_p0 = scmp.ne.s32.totalorder %s1510_s10, 0 }
  0x5b   : > { %952 = vmatmul.mubr.msk.f32.vlgmr.msra.gmra.mxu0 %vm222_vm1, %v221_v2  ;;  %963 = vmatprep.subr.mxu1 %v1233_v0  ;;  %v507_v57 = vsub.s32 4, %v1411_v31  ;;  %s1235_s8 = smov [#allocation8]  }
  0x5c   : > { %955 = vmatpush3.msra.mxu0 %v215_v1  ;;  %956 = vmatprep.mubr.msk.f32.mxu0 %vm1234_vm0, %v1233_v0  ;;  %v402_v35 = vrot.slane %v220_v33, %v401_v32  ;;  %v407_v38 = vrot.slane %v220_v33, %v406_v34  ;;  %v412_v42 = vrot.slane %v220_v33, %v411_v41  ;;  %p1160_p1 = pnand %p1159_p11, %p1516_p0  ;;  %s1162_s16 = sshll.u32 %s1235_s8, 4  ;;  %s1163_s16 = int_to_ptr.vmem [resolvable:$false] %s1162_s16 }
  0x5d   : > { %970 = vmatprep.subr.mxu0 %v1233_v0  ;;  %964 = vmatpush3.msra.mxu1 %v217_v25  ;;  %v503_v58 = vrot.slane %v220_v33, %v502_v56  ;;  %v508_v61 = vrot.slane %v220_v33, %v507_v57  ;;  %v511_v25 = vld [vmem:[#allocation5 + $0x20] sm:$0xff]  ;;  %s1164_s9 = scalar_lea.vmem %s1163_s16, 256  ;;  %p1165_p6 = scmp.lt.s32.totalorder %s819_s25, %s1163_s16 }
  0x5e   : > { %965 = vmatprep.subr.mxu1 %v1233_v0  ;;  %p1161_p2 = pneg %p1160_p1  ;;  %p1166_p12 = scmp.lt.s32.totalorder %s1164_s9, %s1158_s6 }
  0x5f   : > { %966 = vmatpush3.msra.mxu1 %v216_v26 }
  0x60   : > { %980 = vmatprep.subr.mxu1 %v1233_v0  ;;  %p1167_p7 = por %p1166_p12, %p1165_p6 }
  0x62   : > { %p1168_p9 = pnand %p1167_p7, %p1161_p2 }
 0x11b   : > { %v295_v3 = vpop.f32.mrf.mxu0 }
 0x11c   : > { %v300_v4 = vsel %vm299_vm2, %v295_v3, -inf }
 0x11d   : > { %301 = vmax.xlane.f32.xlu0 %v300_v4  ;;  %v953_v5 = vpop.f32.mrf.mxu0 }
 0x1a6   : > { %v302_v6 = vpop.xlane.xlu0 %301 }
 0x1a7   : > { %v303_v7 = vsub.f32 %v295_v3, %v302_v6 }
 0x1a9   : > { %v304_v8 = vmul.f32 1.442695, %v303_v7 }
 0x1ab   : > { %1062 = vpow2.f32 %v304_v8 }
 0x1b8   : > { %v1063_v9 = vpop.eup %1062 }
 0x1b9   : > { %v306_v10 = vsel %vm299_vm2, %v1063_v9, 0.0 }
 0x1ba   : > { %307 = vadd.xlane.f32.xlu0 %v306_v10 }
 0x243   : > { %v308_v11 = vpop.xlane.xlu0 %307 }
 0x244   : > { %1064 = vrcp.f32 %v308_v11 }
 0x251   : > { %v1065_v12 = vpop.eup %1064 }
 0x252   : > { %v310_v13 = vmul.f32 %v1065_v12, %v1063_v9 }
 0x254   : > { %957 = vmatmul.mubr.msk.f32.vlgmr.msra.gmra.mxu0 %vm299_vm2, %v310_v13 }
 0x255   : > { %972 = vmatprep.mubr.msk.f32.mxu0 %vm1234_vm0, %v1233_v0 }
 0x314   : > { %v380_v14 = vpop.f32.mrf.mxu0 }
 0x315   : > { %v384_v15 = vadd.f32 %v380_v14, %v215_v1 }
 0x316   : > { %v958_v16 = vpop.f32.mrf.mxu0 }
 0x317   : > { %v385_v17 = vsel %vm222_vm1, %v384_v15, 0.0 }
 0x318   : > { %386 = vadd.xlane.f32.xlu1 %v385_v17 }
 0x3a1   : > { %v387_v18 = vpop.xlane.xlu1 %386 }
 0x3a2   : > { %v389_v19 = vmul.f32 0.03125, %v387_v18 }
 0x3a4   : > { %v390_v20 = vsub.f32 %v384_v15, %v389_v19 }
 0x3a6   : > { %v391_v21 = vmul.f32 %v390_v20, %v390_v20 }
 0x3a8   : > { %v392_v22 = vsel %vm222_vm1, %v391_v21, 0.0 }
 0x3a9   : > { %393 = vadd.xlane.f32.xlu1 %v392_v22  ;;  %v514_v22 = vld [vmem:[#allocation5 + $0x38] sm:$0xff] }
 0x432   : > { %v394_v27 = vpop.xlane.xlu1 %393 }
 0x433   : > { %v395_v28 = vmul.f32 0.03125, %v394_v27 }
 0x435   : > { %v396_v29 = vadd.f32 1e-05, %v395_v28 }
 0x437   : > { %1066 = vrsqrt.f32 %v396_v29  ;;  %v516_v29 = vld [vmem:[#allocation7 + $0x8] sm:$0xff] }
 0x438   : > { %v695_v30 = vrot.slane %v516_v29, %v401_v32 }
 0x444   : > { %v1067_v36 = vpop.eup %1066 }
 0x445   : > { %v398_v37 = vmul.f32 %v1067_v36, %v390_v20 }
 0x447   : > { %v403_v39 = vmul.f32 %v402_v35, %v398_v37  ;;  %v700_v35 = vrot.slane %v516_v29, %v406_v34 }
 0x449   : > { %v408_v40 = vadd.f32 %v407_v38, %v403_v39 }
 0x44b   : > { %968 = vmatmul.mubr.msk.f32.vlgmr.msra.gmra.mxu1 %vm222_vm1, %v408_v40 }
 0x44c   : > { %988 = vmatprep.mubr.msk.f32.mxu1 %vm1234_vm0, %v1233_v0  ;;  %981 = vmatpush3.msra.mxu1 %v514_v22 }
 0x44d   : > { %982 = vmatprep.subr.mxu1 %v1233_v0 }
 0x44e   : > { %983 = vmatpush3.msra.mxu1 %v513_v23 }
 0x44f   : > { %984 = vmatprep.subr.mxu1 %v1233_v0 }
 0x450   : > { %985 = vmatpush3.msra.mxu1 %v512_v24 }
 0x451   : > { %986 = vmatprep.subr.mxu1 %v1233_v0 }
 0x452   : > { %987 = vmatpush3.msra.mxu1 %v511_v25 }
 0x50b   : > { %v482_v43 = vpop.f32.mrf.mxu1 }
 0x50c   : > { %v483_v44 = vadd.f32 %v482_v43, %v412_v42 }
 0x50d   : > { %v969_v45 = vpop.f32.mrf.mxu1 }
 0x50e   : > { %v486_v46 = vadd.f32 %v483_v44, %v408_v40 }
 0x510   : > { %v487_v47 = vsel %vm222_vm1, %v486_v46, 0.0 }
 0x511   : > { %488 = vadd.xlane.f32.xlu0 %v487_v47 }
 0x59a   : > { %v489_v48 = vpop.xlane.xlu0 %488 }
 0x59b   : > { %v490_v49 = vmul.f32 0.03125, %v489_v48 }
 0x59d   : > { %v491_v50 = vsub.f32 %v486_v46, %v490_v49 }
 0x59f   : > { %v492_v51 = vmul.f32 %v491_v50, %v491_v50 }
 0x5a1   : > { %v493_v52 = vsel %vm222_vm1, %v492_v51, 0.0 }
 0x5a2   : > { %494 = vadd.xlane.f32.xlu1 %v493_v52 }
 0x62b   : > { %v495_v53 = vpop.xlane.xlu1 %494 }
 0x62c   : > { %v496_v54 = vmul.f32 0.03125, %v495_v53  ;;  %v801_v53 = vrot.slane %v516_v29, %v507_v57 }
 0x62e   : > { %v497_v55 = vadd.f32 1e-05, %v496_v54 }
 0x630   : > { %1068 = vrsqrt.f32 %v497_v55 }
 0x63d   : > { %v1069_v59 = vpop.eup %1068 }
 0x63e   : > { %v499_v60 = vmul.f32 %v1069_v59, %v491_v50  ;;  %v796_v50 = vrot.slane %v516_v29, %v502_v56 }
 0x640   : > { %v504_v62 = vmul.f32 %v503_v58, %v499_v60 }
 0x642   : > { %v509_v63 = vadd.f32 %v508_v61, %v504_v62 }
 0x644   : > { %971 = vmatpush3.xpose.msk.msra.mxu0 %vm222_vm1, %v509_v63  ;;  %v517_v1 = vmul.f32 0.17677669, %v509_v63 }
 0x645   : > { %975 = vmatprep.subr.mxu0 %v1233_v0 }
 0x647   : > { %973 = vmatmul.mubr.msk.f32.vlgmr.msra.gmra.mxu0 %vm222_vm1, %v517_v1 }
 0x648   : > { %976 = vmatpush3.msra.mxu0 %v509_v63  ;;  %977 = vmatprep.mubr.msk.f32.mxu0 %vm1234_vm0, %v1233_v0  ;;  %v705_v0 = vrot.slane %v516_v29, %v411_v41 }
 0x707   : > { %v590_v2 = vpop.f32.mrf.mxu0 }
 0x708   : > { %v594_v3 = vsel %vm299_vm2, %v590_v2, -inf }
 0x709   : > { %595 = vmax.xlane.f32.xlu0 %v594_v3  ;;  %v974_v4 = vpop.f32.mrf.mxu0 }
 0x792   : > { %v596_v5 = vpop.xlane.xlu0 %595 }
 0x793   : > { %v597_v6 = vsub.f32 %v590_v2, %v596_v5 }
 0x795   : > { %v598_v7 = vmul.f32 1.442695, %v597_v6 }
 0x797   : > { %1070 = vpow2.f32 %v598_v7 }
 0x7a4   : > { %v1071_v8 = vpop.eup %1070 }
 0x7a5   : > { %v600_v9 = vsel %vm299_vm2, %v1071_v8, 0.0 }
 0x7a6   : > { %601 = vadd.xlane.f32.xlu1 %v600_v9 }
 0x82f   : > { %v602_v10 = vpop.xlane.xlu1 %601 }
 0x830   : > { %1072 = vrcp.f32 %v602_v10 }
 0x83d   : > { %v1073_v11 = vpop.eup %1072 }
 0x83e   : > { %v604_v12 = vmul.f32 %v1073_v11, %v1071_v8 }
 0x840   : > { %978 = vmatmul.mubr.msk.f32.vlgmr.msra.gmra.mxu0 %vm299_vm2, %v604_v12 }
 0x900   : > { %v674_v13 = vpop.f32.mrf.mxu0 }
 0x901   : > { %v678_v14 = vadd.f32 %v674_v13, %v509_v63 }
 0x902   : > { %v979_v15 = vpop.f32.mrf.mxu0 }
 0x903   : > { %v679_v16 = vsel %vm222_vm1, %v678_v14, 0.0 }
 0x904   : > { %680 = vadd.xlane.f32.xlu0 %v679_v16 }
 0x98d   : > { %v681_v17 = vpop.xlane.xlu0 %680 }
 0x98e   : > { %v682_v18 = vmul.f32 0.03125, %v681_v17 }
 0x990   : > { %v683_v19 = vsub.f32 %v678_v14, %v682_v18 }
 0x992   : > { %v684_v20 = vmul.f32 %v683_v19, %v683_v19 }
 0x994   : > { %v685_v21 = vsel %vm222_vm1, %v684_v20, 0.0 }
 0x995   : > { %686 = vadd.xlane.f32.xlu1 %v685_v21 }
 0xa1e   : > { %v687_v26 = vpop.xlane.xlu1 %686 }
 0xa1f   : > { %v688_v27 = vmul.f32 0.03125, %v687_v26 }
 0xa21   : > { %v689_v28 = vadd.f32 1e-05, %v688_v27 }
 0xa23   : > { %1074 = vrsqrt.f32 %v689_v28 }
 0xa30   : > { %v1075_v33 = vpop.eup %1074 }
 0xa31   : > { %v691_v36 = vmul.f32 %v1075_v33, %v683_v19 }
 0xa33   : > { %v696_v37 = vmul.f32 %v695_v30, %v691_v36 }
 0xa35   : > { %v701_v38 = vadd.f32 %v700_v35, %v696_v37 }
 0xa37   : > { %989 = vmatmul.mubr.msk.f32.vlgmr.msra.gmra.mxu1 %vm222_vm1, %v701_v38 }
 0xaf7   : > { %v775_v39 = vpop.f32.mrf.mxu1 }
 0xaf8   : > { %v776_v40 = vadd.f32 %v775_v39, %v705_v0 }
 0xaf9   : > { %v990_v42 = vpop.f32.mrf.mxu1 }
 0xafa   : > { %v779_v43 = vadd.f32 %v776_v40, %v701_v38 }
 0xafc   : > { %v780_v44 = vsel %vm222_vm1, %v779_v43, 0.0 }
 0xafd   : > { %781 = vadd.xlane.f32.xlu0 %v780_v44 }
 0xb86   : > { %v782_v32 = vpop.xlane.xlu0 %781 }
 0xb87   : > { %v783_v45 = vmul.f32 0.03125, %v782_v32 }
 0xb89   : > { %v784_v34 = vsub.f32 %v779_v43, %v783_v45 }
 0xb8b   : > { %v785_v46 = vmul.f32 %v784_v34, %v784_v34 }
 0xb8d   : > { %v786_v47 = vsel %vm222_vm1, %v785_v46, 0.0 }
 0xb8e   : > { %787 = vadd.xlane.f32.xlu1 %v786_v47 }
 0xc17   : > { %v788_v48 = vpop.xlane.xlu1 %787 }
 0xc18   : > { %v789_v49 = vmul.f32 0.03125, %v788_v48 }
 0xc1a   : > { %v790_v41 = vadd.f32 1e-05, %v789_v49 }
 0xc1c   : > { %1076 = vrsqrt.f32 %v790_v41 }
 0xc29   : > { %v1077_v51 = vpop.eup %1076 }
 0xc2a   : > { %v792_v52 = vmul.f32 %v1077_v51, %v784_v34 }
 0xc2c   : > { %v797_v54 = vmul.f32 %v796_v50, %v792_v52 }
 0xc2e   : > { %v802_v55 = vadd.f32 %v801_v53, %v797_v54 }
 0xc30   : > { %803 = vst.msk [vmem:[%s214_s20] sm:$0xff] %vm222_vm1, %v802_v55 }
 0xc31   : > { %1171 = shalt.err (!%p1168_p9)
}
 0xc32   : > { %s1172_s21 = scalar_lea.hbm %s816_s29, 128  ;;  %s1176_s23 = scalar_lea.hbm %s1500_s3, 256 }
 0xc33   : > { %p1173_p13 = scmp.ne.s32.totalorder %s816_s29, %s1172_s21  ;;  %p1177_p4 = scmp.lt.s32.totalorder %s816_s29, %s1500_s3 }
 0xc34   : > { %p1178_p8 = scmp.lt.s32.totalorder %s1176_s23, %s1172_s21 }
 0xc35   : > { %p1174_p5 = pnand %p1173_p13, %p1516_p0 }
 0xc36   : > { %p1179_p3 = por %p1178_p8, %p1177_p4 }
 0xc37   : > { %p1175_p10 = pneg %p1174_p5 }
 0xc39   : > { %p1180_p11 = pnand %p1179_p3, %p1175_p10 }
 0xc3b   : > { %1183 = shalt.err (!%p1180_p11)
}
 0xc3c   : > { %1001 = dma.vmem_to_hbm [thread:$0]  (%p1516_p0), %s819_s25, 128, %s816_s29, %s805_s5  }
 0xc3d PF: > { %s830_s30 = sand.u32 1, %s1214_s12   ;;  %p1517_p1 = scmp.ne.s32.totalorder %s1506_s19, 0 }
 0xc3e   : > { %p1518_p2 = scmp.ge.s32.totalorder %s1226_s15, 2  ;;  %s831_s4 = scalar_lea.sflag [#allocation4], %s830_s30 }
 0xc40   : > { %p1015_p6 = pnand %p1518_p2, %p1517_p1 }
 0xc42   : > { %p1016_p12 = pneg %p1015_p6 }
 0xc44   : > { %1209 = dma.done.wait (%p1016_p12), %s831_s4, 128  }
 0xc45   : > { %1211 = vsyncadd (%p1016_p12), %s831_s4, 4294967168  ;;  %p17_p7 = scmp.ge.s32.totalorder %s1328_s7, 4   ;;  %s1519_s12 = smov %s1218_s13 }
 0xc46   : > { %s1520_s13 = smov %s1222_s14  ;;  %s1521_s14 = smov %s1344_s11 }
 0xc47   : > { %s1522_s15 = smov %s1328_s7  ;;  %19 = sbr.rel (!%p17_p7) target bundleno = 6 (0x6), region = 87 }
 0xc4c   :  { %836 = vsyncpa [#allocation3], 1 }
 0xc4d   :  { %838 = vsyncpa [#allocation3 + $0x1], 1 }
 0xc4e   :  { %839 = vsyncpa [#allocation6], 1 }
 0xc4f   :  { %840 = vsyncpa [#allocation4], 1 }
 0xc50   :  { %842 = vsyncpa [#allocation4 + $0x1], 1 }

</bundles_post_ra>
